<compile_context>
chip_gen: v7x
topology: tpu7x:2x2x1
jax: 0.10.0
libtpu: 0.0.40
codegen_flags: <defaults>
</compile_context>

<pallas_src>
import jax
import jax.numpy as jnp
from jax.experimental import pallas as pl
from jax.experimental.pallas import tpu as pltpu

LANE = 128   # TPU lane width; batch tiles are multiples of this
HPAD = 128   # padded hidden dim (logical hidden_dim <= 128)


def _round_up(n, m):
    return ((n + m - 1) // m) * m


def _cdiv(a, b):
    return (a + b - 1) // b


def _default_compute_dtype():
    """bf16 matmul/tanh path on v6e/v7x, f32 elsewhere (v5e has no bf16 VPU/EUP)."""
    try:
        kind = jax.devices()[0].device_kind.lower()
    except Exception:
        return jnp.float32
    if "v6" in kind or "v7" in kind:
        return jnp.bfloat16
    return jnp.float32


def critic_kernel(xT_ref, w1_ref, b1_ref, w2_ref, b2_ref, w3_ref, b3_ref, v_ref):
    """Transposed (batch-in-lanes) 3-layer MLP.

    xT_ref : (dinp, tb)   compute dtype          (batch on lanes)
    w1_ref : (HPAD, dinp) compute dtype          b1_ref : (HPAD, 1) f32
    w2_ref : (HPAD, HPAD) compute dtype          b2_ref : (HPAD, 1) f32
    w3_ref : (HPAD, 1)    f32 (value head)       b3_ref : (1, 1)    f32
    v_ref  : (1, tb)      f32 lane-dense output row
    """
    cdt = xT_ref.dtype                     # bf16 on v6e/v7x, f32 on v5e
    xT = xT_ref[...]                                                   # (dinp, tb)

    z1 = jnp.dot(w1_ref[...], xT, preferred_element_type=jnp.float32) + b1_ref[...]
    h1 = jnp.tanh(z1.astype(cdt))                                      # (HPAD, tb)

    z2 = jnp.dot(w2_ref[...], h1, preferred_element_type=jnp.float32) + b2_ref[...]
    h2 = jnp.tanh(z2.astype(cdt))                                      # (HPAD, tb)

    # Value head as an f32 multiply + sublane-reduce: padded hidden rows are
    # exactly zero, so they contribute nothing.  Output row is lane-dense.
    v = jnp.sum(w3_ref[...] * h2.astype(jnp.float32), axis=0, keepdims=True)
    v_ref[...] = v + b3_ref[...]                                       # (1, tb) f32


def critic_forward(x, padded_params, *, max_tb=2048, compute_dtype=None):
    """Returns the state value v with shape (B,), like torch's .squeeze()."""
    w1T, b1, w2T, b2, w3, b3 = padded_params
    B, din = x.shape
    dinp = w1T.shape[1]

    if compute_dtype is None:
        compute_dtype = _default_compute_dtype()

    # Balanced, lane-aligned batch tile.  >= 2 grid steps once B >= 256 so the
    # "parallel" axis can shard across both v7x TensorCores.
    nsteps = max(_cdiv(B, max_tb), 2 if B >= 2 * LANE else 1)
    tb = _round_up(_cdiv(B, nsteps), LANE)
    nsteps = _cdiv(B, tb)
    bp = nsteps * tb

    # Pad batch -> bp and features -> dinp (zeros: exact), then transpose so
    # the batch sits on the lane axis.  Matmul operands use the compute dtype.
    xp = jnp.pad(x, ((0, bp - B), (0, dinp - din))).astype(compute_dtype)
    xT = xp.T                                                          # (dinp, bp)
    w1c = w1T.astype(compute_dtype)
    w2c = w2T.astype(compute_dtype)

    out = pl.pallas_call(
        critic_kernel,
        out_shape=jax.ShapeDtypeStruct((1, bp), jnp.float32),
        grid=(nsteps,),
        in_specs=[
            pl.BlockSpec((dinp, tb), lambda i: (0, i)),    # xT: streams over batch lanes
            pl.BlockSpec((HPAD, dinp), lambda i: (0, 0)),  # w1^T (VMEM resident)
            pl.BlockSpec((HPAD, 1), lambda i: (0, 0)),     # b1
            pl.BlockSpec((HPAD, HPAD), lambda i: (0, 0)),  # w2^T
            pl.BlockSpec((HPAD, 1), lambda i: (0, 0)),     # b2
            pl.BlockSpec((HPAD, 1), lambda i: (0, 0)),     # w3 column (f32 value head)
            pl.BlockSpec((1, 1), lambda i: (0, 0)),        # b3
        ],
        out_specs=pl.BlockSpec((1, tb), lambda i: (0, i)),  # lane-dense (1, tb) row
        compiler_params=pltpu.CompilerParams(
            dimension_semantics=("parallel",)),             # v7x: 2 TCs share the batch
    )(xT, w1c, b1, w2c, b2, w3, b3)

    # Contiguous slice of the real batch rows (no strided column gather).
    return out[0, :B]


def init_critic_params(key, input_dim, hidden_dim=64):
    """Logical (unpadded) params, uniform init roughly matching nn.Linear."""
    ks = jax.random.split(key, 6)

    def lin(kw, kb, fan_in, fan_out):
        bound = 1.0 / jnp.sqrt(jnp.float32(fan_in))
        w = jax.random.uniform(kw, (fan_in, fan_out), jnp.float32, -bound, bound)
        b = jax.random.uniform(kb, (fan_out,), jnp.float32, -bound, bound)
        return w, b

    w1, b1 = lin(ks[0], ks[1], input_dim, hidden_dim)
    w2, b2 = lin(ks[2], ks[3], hidden_dim, hidden_dim)
    w3, b3 = lin(ks[4], ks[5], hidden_dim, 1)
    return (w1, b1, w2, b2, w3, b3)


def pad_critic_params(params):
    """Transpose + zero-pad params into the kernel's batch-in-lanes layout."""
    w1, b1, w2, b2, w3, b3 = params
    din, hid = w1.shape
    dinp = _round_up(din, 8)

    w1T = jnp.zeros((HPAD, dinp), jnp.float32).at[:hid, :din].set(w1.T)
    b1c = jnp.zeros((HPAD, 1), jnp.float32).at[:hid, 0].set(b1)
    w2T = jnp.zeros((HPAD, HPAD), jnp.float32).at[:hid, :hid].set(w2.T)
    b2c = jnp.zeros((HPAD, 1), jnp.float32).at[:hid, 0].set(b2)
    w3c = jnp.zeros((HPAD, 1), jnp.float32).at[:hid, :].set(w3)
    b3c = b3.reshape(1, 1).astype(jnp.float32)
    return (w1T, b1c, w2T, b2c, w3c, b3c)


def critic_forward_ref(x, params):
    """Pure-JAX reference on the unpadded params."""
    w1, b1, w2, b2, w3, b3 = params
    h1 = jnp.tanh(x @ w1 + b1)
    h2 = jnp.tanh(h1 @ w2 + b2)
    return (h2 @ w3 + b3)[:, 0]


if __name__ == "__main__":
    key = jax.random.PRNGKey(0)
    k_params, k_x = jax.random.split(key)

    batch = 8
    input_dim = 4      # e.g. pendulum-cart state dim
    hidden_dim = 64    # module default

    params = init_critic_params(k_params, input_dim, hidden_dim)
    padded = pad_critic_params(params)
    x = jax.random.normal(k_x, (batch, input_dim), jnp.float32)

    v_ref = critic_forward_ref(x, params)

    # Exact-precision path (f32 everywhere) — tight tolerance.
    v32 = critic_forward(x, padded, compute_dtype=jnp.float32)
    jax.block_until_ready(v32)
    assert v32.shape == (batch,)
    assert jnp.allclose(v32, v_ref, atol=1e-5, rtol=1e-5)

    # Hardware-default path (bf16 matmul/tanh on v6e/v7x, f32 on v5e) —
    # looser tolerance since bf16 operands carry ~3 significant digits.
    v_def = critic_forward(x, padded)
    jax.block_until_ready(v_def)
    assert v_def.shape == (batch,)
    assert jnp.allclose(v_def, v_ref, atol=5e-2, rtol=5e-2)

    print("KERNEL_OK")
</pallas_src>

<mosaic_0001>
module attributes {stable_mosaic.version = 11 : i64} {
  func.func @critic_kernel(%arg0: i32, %arg1: memref<8x128xf32, #tpu.memory_space<vmem>>, %arg2: memref<128x8xf32, #tpu.memory_space<vmem>>, %arg3: memref<128x1xf32, #tpu.memory_space<vmem>>, %arg4: memref<128x128xf32, #tpu.memory_space<vmem>>, %arg5: memref<128x1xf32, #tpu.memory_space<vmem>>, %arg6: memref<128x1xf32, #tpu.memory_space<vmem>>, %arg7: memref<1x1xf32, #tpu.memory_space<vmem>>, %arg8: memref<1x128xf32, #tpu.memory_space<vmem>>) attributes {dimension_semantics = [#tpu.dimension_semantics<parallel>], iteration_bounds = array<i64: 1>, scalar_prefetch = 0 : i64, scratch_operands = 0 : i64, tpu.core_type = #tpu.core_type<tc>, window_params = [{transform_indices = @transform_0, window_bounds = array<i64: 8, 128>}, {pipeline_mode = #tpu.pipeline_mode<synchronous>, transform_indices = @transform_1, window_bounds = array<i64: 128, 8>}, {pipeline_mode = #tpu.pipeline_mode<synchronous>, transform_indices = @transform_2, window_bounds = array<i64: 128, 1>}, {pipeline_mode = #tpu.pipeline_mode<synchronous>, transform_indices = @transform_3, window_bounds = array<i64: 128, 128>}, {pipeline_mode = #tpu.pipeline_mode<synchronous>, transform_indices = @transform_4, window_bounds = array<i64: 128, 1>}, {pipeline_mode = #tpu.pipeline_mode<synchronous>, transform_indices = @transform_5, window_bounds = array<i64: 128, 1>}, {pipeline_mode = #tpu.pipeline_mode<synchronous>, transform_indices = @transform_6, window_bounds = array<i64: 1, 1>}, {transform_indices = @transform_7, window_bounds = array<i64: 1, 128>}]} {
    %c0 = arith.constant 0 : index
    %c0_0 = arith.constant 0 : index
    %0 = vector.load %arg1[%c0, %c0_0] : memref<8x128xf32, #tpu.memory_space<vmem>>, vector<8x128xf32>
    %c0_1 = arith.constant 0 : index
    %c0_2 = arith.constant 0 : index
    %1 = vector.load %arg2[%c0_1, %c0_2] : memref<128x8xf32, #tpu.memory_space<vmem>>, vector<128x8xf32>
    %cst = arith.constant dense<0.000000e+00> : vector<128x128xf32>
    %2 = tpu.matmul %1, %0, %cst {dimension_numbers = #tpu.dot_dimension_numbers<[1], [0], [0], [1], [0, 0, 1, 1], [], []>} : vector<128x8xf32>, vector<8x128xf32>, vector<128x128xf32> -> vector<128x128xf32>
    %c0_3 = arith.constant 0 : index
    %c0_4 = arith.constant 0 : index
    %3 = vector.load %arg3[%c0_3, %c0_4] : memref<128x1xf32, #tpu.memory_space<vmem>>, vector<128x1xf32>
    %4 = vector.broadcast %3 : vector<128x1xf32> to vector<128x128xf32>
    %5 = arith.addf %2, %4 : vector<128x128xf32>
    %6 = math.tanh %5 : vector<128x128xf32>
    %c0_5 = arith.constant 0 : index
    %c0_6 = arith.constant 0 : index
    %7 = vector.load %arg4[%c0_5, %c0_6] : memref<128x128xf32, #tpu.memory_space<vmem>>, vector<128x128xf32>
    %cst_7 = arith.constant dense<0.000000e+00> : vector<128x128xf32>
    %8 = tpu.matmul %7, %6, %cst_7 {dimension_numbers = #tpu.dot_dimension_numbers<[1], [0], [0], [1], [0, 0, 1, 1], [], []>} : vector<128x128xf32>, vector<128x128xf32>, vector<128x128xf32> -> vector<128x128xf32>
    %c0_8 = arith.constant 0 : index
    %c0_9 = arith.constant 0 : index
    %9 = vector.load %arg5[%c0_8, %c0_9] : memref<128x1xf32, #tpu.memory_space<vmem>>, vector<128x1xf32>
    %10 = vector.broadcast %9 : vector<128x1xf32> to vector<128x128xf32>
    %11 = arith.addf %8, %10 : vector<128x128xf32>
    %12 = math.tanh %11 : vector<128x128xf32>
    %c0_10 = arith.constant 0 : index
    %c0_11 = arith.constant 0 : index
    %13 = vector.load %arg6[%c0_10, %c0_11] : memref<128x1xf32, #tpu.memory_space<vmem>>, vector<128x1xf32>
    %14 = vector.broadcast %13 : vector<128x1xf32> to vector<128x128xf32>
    %15 = arith.mulf %14, %12 : vector<128x128xf32>
    %cst_12 = arith.constant dense<0.000000e+00> : vector<128xf32>
    %16 = vector.multi_reduction <add>, %15, %cst_12 [0] : vector<128x128xf32> to vector<128xf32>
    %17 = vector.shape_cast %16 : vector<128xf32> to vector<1x128xf32>
    %c0_13 = arith.constant 0 : index
    %c0_14 = arith.constant 0 : index
    %18 = vector.load %arg7[%c0_13, %c0_14] : memref<1x1xf32, #tpu.memory_space<vmem>>, vector<1x1xf32>
    %19 = vector.broadcast %18 : vector<1x1xf32> to vector<1x128xf32>
    %20 = arith.addf %17, %19 : vector<1x128xf32>
    %c0_15 = arith.constant 0 : index
    %c0_16 = arith.constant 0 : index
    %21 = vector.load %arg8[%c0_15, %c0_16] : memref<1x128xf32, #tpu.memory_space<vmem>>, vector<1x128xf32>
    tpu.vector_store %arg8[%c0_15, %c0_16], %20 {strides = array<i32>} : memref<1x128xf32, #tpu.memory_space<vmem>>, vector<1x128xf32>,
    return
  }
  func.func @transform_0(%arg0: i32) -> (i32, i32) {
    %c0_i32 = arith.constant 0 : i32
    %c0_i32_0 = arith.constant 0 : i32
    return %c0_i32, %arg0 : i32, i32
  }
  func.func @transform_1(%arg0: i32) -> (i32, i32) {
    %c0_i32 = arith.constant 0 : i32
    %c0_i32_0 = arith.constant 0 : i32
    %c0_i32_1 = arith.constant 0 : i32
    return %c0_i32, %c0_i32_0 : i32, i32
  }
  func.func @transform_2(%arg0: i32) -> (i32, i32) {
    %c0_i32 = arith.constant 0 : i32
    %c0_i32_0 = arith.constant 0 : i32
    %c0_i32_1 = arith.constant 0 : i32
    return %c0_i32, %c0_i32_0 : i32, i32
  }
  func.func @transform_3(%arg0: i32) -> (i32, i32) {
    %c0_i32 = arith.constant 0 : i32
    %c0_i32_0 = arith.constant 0 : i32
    %c0_i32_1 = arith.constant 0 : i32
    return %c0_i32, %c0_i32_0 : i32, i32
  }
  func.func @transform_4(%arg0: i32) -> (i32, i32) {
    %c0_i32 = arith.constant 0 : i32
    %c0_i32_0 = arith.constant 0 : i32
    %c0_i32_1 = arith.constant 0 : i32
    return %c0_i32, %c0_i32_0 : i32, i32
  }
  func.func @transform_5(%arg0: i32) -> (i32, i32) {
    %c0_i32 = arith.constant 0 : i32
    %c0_i32_0 = arith.constant 0 : i32
    %c0_i32_1 = arith.constant 0 : i32
    return %c0_i32, %c0_i32_0 : i32, i32
  }
  func.func @transform_6(%arg0: i32) -> (i32, i32) {
    %c0_i32 = arith.constant 0 : i32
    %c0_i32_0 = arith.constant 0 : i32
    %c0_i32_1 = arith.constant 0 : i32
    return %c0_i32, %c0_i32_0 : i32, i32
  }
  func.func @transform_7(%arg0: i32) -> (i32, i32) {
    %c0_i32 = arith.constant 0 : i32
    %c0_i32_0 = arith.constant 0 : i32
    return %c0_i32, %arg0 : i32, i32
  }
}

</mosaic_0001>

<bundles_post_ra>
// kernel: tpu_custom_call.1
= control target key start
LH: loop header
LB: loop body
LE: loop exit
PB: predicated region body
PF: predicated region fallthrough
CT: control target
= control target key end

     0   :  { %s1390_s0 = inlined_call_operand.vmem [shape: f32[8,128], index: 0, kind: input, shape index: {}]   ;;  %s1391_s1 = inlined_call_operand.vmem [shape: f32[128,8], index: 1, kind: input, shape index: {}]   ;;  %s1392_s2 = inlined_call_operand.vmem [shape: f32[128,1], index: 2, kind: input, shape index: {}]   ;;  %s1393_s3 = inlined_call_operand.vmem [shape: f32[128,128], index: 3, kind: input, shape index: {}]   ;;  %s1394_s4 = inlined_call_operand.vmem [shape: f32[128,1], index: 4, kind: input, shape index: {}]   ;;  %s1395_s5 = inlined_call_operand.vmem [shape: f32[128,1], index: 5, kind: input, shape index: {}]   ;;  %s1396_s6 = inlined_call_operand.<no memory space> [shape: f32[1,1], index: 6, kind: input, shape index: {}]   ;;  %s1397_s7 = inlined_call_operand.hbm [shape: f32[1,128], index: 7, kind: output, shape index: {}]  }
   0x1   :  { %v12_v0 = vstv %s1396_s6 }
   0x2   :  { %13 = vst [vmem:[#allocation2] sm:$0x1] %v12_v0 }
   0x3   :  { %v29_v1 = vld [vmem:[%s1390_s0] sm:$0xff]  ;;  %v48_v2 = vld [vmem:[%s1392_s2 + $0x10] sm:$0xff]  ;;  %v1071_v4 = vmov 0   ;;  %vm142_vm0 = vcmask 64512   ;;  %v31_v6 = vld [vmem:[%s1391_s1 + $0x8] sm:$0xff] }
   0x4   :  { %v46_v3 = vld [vmem:[%s1392_s2] sm:$0xff]  ;;  %982 = vset.pattern.permute.xlu1 %v1071_v4  ;;  %981 = vset.pattern.permute.xlu0 %v1071_v4  ;;  %v49_v7 = vld [vmem:[%s1392_s2 + $0x18] sm:$0xff]  ;;  %v32_v8 = vld [vmem:[%s1391_s1 + $0x10] sm:$0xff] }
   0x5   :  { %v30_v5 = vld [vmem:[%s1391_s1] sm:$0xff]  ;;  %849 = vmatprep.subr.mxu0 %v29_v1  ;;  %74 = vperm.xlu1 %982, %v48_v2   ;;  %v47_v9 = vld [vmem:[%s1392_s2 + $0x8] sm:$0xff]  ;;  %v33_v10 = vld [vmem:[%s1391_s1 + $0x18] sm:$0xff] }
   0x6   :  { %64 = vperm.xlu0 %981, %v46_v3   ;;  %850 = vmatpush3.msra.mxu0 %v29_v1  ;;  %v51_v11 = vld [vmem:[%s1392_s2 + $0x28] sm:$0xff]  ;;  %v34_v12 = vld [vmem:[%s1391_s1 + $0x20] sm:$0xff]  ;;  %v53_v15 = vld [vmem:[%s1392_s2 + $0x38] sm:$0xff] }
   0x7   :  { %851 = vmatprep.mubr.msk.f32.mxu0 %vm142_vm0, %v30_v5  ;;  %v50_v13 = vld [vmem:[%s1392_s2 + $0x20] sm:$0xff]  ;;  %v35_v14 = vld [vmem:[%s1391_s1 + $0x28] sm:$0xff]  ;;  %v36_v16 = vld [vmem:[%s1391_s1 + $0x30] sm:$0xff] }
   0x8   :  { %852 = vmatmul.mubr.msk.f32.vlgmr.msra.gmra.mrb[0].mxu0 %vm142_vm0, %v31_v6  ;;  %v52_v17 = vld [vmem:[%s1392_s2 + $0x30] sm:$0xff]  ;;  %v37_v18 = vld [vmem:[%s1391_s1 + $0x38] sm:$0xff]  ;;  %v55_v19 = vld [vmem:[%s1392_s2 + $0x48] sm:$0xff] }
   0x9   :  { %79 = vperm.xlu1 %982, %v49_v7   ;;  %854 = vmatprep.mubr.msk.f32.mxu0 %vm142_vm0, %v32_v8  ;;  %v38_v20 = vld [vmem:[%s1391_s1 + $0x40] sm:$0xff]  ;;  %v39_v22 = vld [vmem:[%s1391_s1 + $0x48] sm:$0xff]  ;;  %v57_v23 = vld [vmem:[%s1392_s2 + $0x58] sm:$0xff] }
   0xa   :  { %69 = vperm.xlu0 %981, %v47_v9   ;;  %v54_v21 = vld [vmem:[%s1392_s2 + $0x40] sm:$0xff]  ;;  %v40_v24 = vld [vmem:[%s1391_s1 + $0x50] sm:$0xff]  ;;  %v41_v26 = vld [vmem:[%s1391_s1 + $0x58] sm:$0xff] }
   0xb   :  { %v56_v25 = vld [vmem:[%s1392_s2 + $0x50] sm:$0xff] }
   0xc   :  { %855 = vmatmul.mubr.msk.f32.gmra.mrb[2].mxu0 %vm142_vm0, %v33_v10 }
   0xd   :  { %89 = vperm.xlu1 %982, %v51_v11   ;;  %857 = vmatprep.mubr.msk.f32.mxu0 %vm142_vm0, %v34_v12 }
   0xe   :  { %84 = vperm.xlu0 %981, %v50_v13  }
  0x10   :  { %858 = vmatmul.mubr.msk.f32.gmra.mrb[4].mxu0 %vm142_vm0, %v35_v14 }
  0x11   :  { %99 = vperm.xlu1 %982, %v53_v15   ;;  %860 = vmatprep.mubr.msk.f32.mxu0 %vm142_vm0, %v36_v16 }
  0x12   :  { %94 = vperm.xlu0 %981, %v52_v17  }
  0x14   :  { %861 = vmatmul.mubr.msk.f32.gmra.mrb[6].mxu0 %vm142_vm0, %v37_v18 }
  0x15   :  { %109 = vperm.xlu1 %982, %v55_v19   ;;  %863 = vmatprep.mubr.msk.f32.mxu0 %vm142_vm0, %v38_v20 }
  0x16   :  { %104 = vperm.xlu0 %981, %v54_v21  }
  0x18   :  { %864 = vmatmul.mubr.msk.f32.gmra.mrb[8].mxu0 %vm142_vm0, %v39_v22 }
  0x19   :  { %119 = vperm.xlu1 %982, %v57_v23   ;;  %866 = vmatprep.mubr.msk.f32.mxu0 %vm142_vm0, %v40_v24 }
  0x1a   :  { %14 = vsyncpa [#allocation4], 0  ;;  %114 = vperm.xlu0 %981, %v56_v25   ;;  %v59_v27 = vld [vmem:[%s1392_s2 + $0x68] sm:$0xff]  ;;  %v42_v28 = vld [vmem:[%s1391_s1 + $0x60] sm:$0xff] }
  0x1b   :  { %v58_v29 = vld [vmem:[%s1392_s2 + $0x60] sm:$0xff]  ;;  %v43_v30 = vld [vmem:[%s1391_s1 + $0x68] sm:$0xff]  ;;  %v61_v31 = vld [vmem:[%s1392_s2 + $0x78] sm:$0xff] }
  0x1c   :  { %867 = vmatmul.mubr.msk.f32.gmra.mrb[10].mxu0 %vm142_vm0, %v41_v26  ;;  %v44_v32 = vld [vmem:[%s1391_s1 + $0x70] sm:$0xff]  ;;  %v45_v34 = vld [vmem:[%s1391_s1 + $0x78] sm:$0xff]  ;;  %v369_v35 = vld [vmem:[%s1394_s4 + $0x8] sm:$0xff] }
  0x1d   :  { %129 = vperm.xlu1 %982, %v59_v27   ;;  %869 = vmatprep.mubr.msk.f32.mxu0 %vm142_vm0, %v42_v28  ;;  %v60_v33 = vld [vmem:[%s1392_s2 + $0x70] sm:$0xff]  ;;  %v368_v36 = vld [vmem:[%s1394_s4] sm:$0xff]  ;;  %v371_v37 = vld [vmem:[%s1394_s4 + $0x18] sm:$0xff] }
  0x1e   :  { %124 = vperm.xlu0 %981, %v58_v29   ;;  %v370_v38 = vld [vmem:[%s1394_s4 + $0x10] sm:$0xff]  ;;  %v373_v39 = vld [vmem:[%s1394_s4 + $0x28] sm:$0xff]  ;;  %v372_v40 = vld [vmem:[%s1394_s4 + $0x20] sm:$0xff] }
  0x1f   :  { %v375_v41 = vld [vmem:[%s1394_s4 + $0x38] sm:$0xff]  ;;  %v374_v42 = vld [vmem:[%s1394_s4 + $0x30] sm:$0xff]  ;;  %v626_v43 = vld [vmem:[%s1395_s5 + $0x8] sm:$0xff] }
  0x20   :  { %870 = vmatmul.mubr.msk.f32.gmra.mrb[12].mxu0 %vm142_vm0, %v43_v30  ;;  %v625_v44 = vld [vmem:[%s1395_s5] sm:$0xff]  ;;  %v627_v45 = vld [vmem:[%s1395_s5 + $0x10] sm:$0xff]  ;;  %v628_v47 = vld [vmem:[%s1395_s5 + $0x18] sm:$0xff] }
  0x21   :  { %139 = vperm.xlu1 %982, %v61_v31   ;;  %872 = vmatprep.mubr.msk.f32.mxu0 %vm142_vm0, %v44_v32  ;;  %v376_v46 = vld [vmem:[%s1394_s4 + $0x40] sm:$0xff]  ;;  %v377_v48 = vld [vmem:[%s1394_s4 + $0x48] sm:$0xff]  ;;  %v378_v50 = vld [vmem:[%s1394_s4 + $0x50] sm:$0xff] }
  0x22   :  { %134 = vperm.xlu0 %981, %v60_v33   ;;  %v629_v49 = vld [vmem:[%s1395_s5 + $0x20] sm:$0xff]  ;;  %v630_v51 = vld [vmem:[%s1395_s5 + $0x28] sm:$0xff]  ;;  %v379_v52 = vld [vmem:[%s1394_s4 + $0x58] sm:$0xff] }
  0x23   :  { %v631_v53 = vld [vmem:[%s1395_s5 + $0x30] sm:$0xff]  ;;  %v380_v54 = vld [vmem:[%s1394_s4 + $0x60] sm:$0xff]  ;;  %v632_v55 = vld [vmem:[%s1395_s5 + $0x38] sm:$0xff] }
  0x24   :  { %873 = vmatmul.mubr.msk.f32.gmra.mrb[14].mxu0 %vm142_vm0, %v45_v34  ;;  %v381_v56 = vld [vmem:[%s1394_s4 + $0x68] sm:$0xff]  ;;  %v633_v57 = vld [vmem:[%s1395_s5 + $0x40] sm:$0xff]  ;;  %v382_v58 = vld [vmem:[%s1394_s4 + $0x70] sm:$0xff] }
  0x25   :  { %391 = vperm.xlu1 %982, %v369_v35   ;;  %v634_v59 = vld [vmem:[%s1395_s5 + $0x48] sm:$0xff]  ;;  %v383_v60 = vld [vmem:[%s1394_s4 + $0x78] sm:$0xff]  ;;  %v635_v62 = vld [vmem:[%s1395_s5 + $0x50] sm:$0xff] }
  0x26   :  { %386 = vperm.xlu0 %981, %v368_v36   ;;  %v636_v61 = vld [vmem:[%s1395_s5 + $0x58] sm:$0xff]  ;;  %v638_v63 = vld [vmem:[%s1395_s5 + $0x68] sm:$0xff]  ;;  %v637_v0 = vld [vmem:[%s1395_s5 + $0x60] sm:$0xff] }
  0x27   :  { %v640_v1 = vld [vmem:[%s1395_s5 + $0x78] sm:$0xff]  ;;  %v639_v2 = vld [vmem:[%s1395_s5 + $0x70] sm:$0xff]  ;;  %v758_v3 = vld [vmem:[#allocation2] sm:$0x1] }
  0x28   :  { %v352_v4 = vld [vmem:[%s1393_s3] sm:$0xff]  ;;  %v358_v5 = vld [vmem:[%s1393_s3 + $0x30] sm:$0xff] }
  0x29   :  { %401 = vperm.xlu1 %982, %v371_v37   ;;  %907 = vmatprep.mubr.f32.mxu0 %v352_v4 }
  0x2a   :  { %396 = vperm.xlu0 %981, %v370_v38   ;;  %916 = vmatprep.mubr.f32.mxu1 %v358_v5 }
  0x2d   :  { %411 = vperm.xlu1 %982, %v373_v39  }
  0x2e   :  { %406 = vperm.xlu0 %981, %v372_v40  }
  0x31   :  { %421 = vperm.xlu1 %982, %v375_v41  }
  0x32   :  { %416 = vperm.xlu0 %981, %v374_v42  }
  0x35   :  { %648 = vperm.xlu1 %982, %v626_v43  }
  0x36   :  { %643 = vperm.xlu0 %981, %v625_v44  }
  0x39   :  { %653 = vperm.xlu1 %982, %v627_v45  }
  0x3a   :  { %426 = vperm.xlu0 %981, %v376_v46  }
  0x3d   :  { %658 = vperm.xlu1 %982, %v628_v47  }
  0x3e   :  { %431 = vperm.xlu0 %981, %v377_v48  }
  0x41   :  { %663 = vperm.xlu1 %982, %v629_v49  }
  0x42   :  { %436 = vperm.xlu0 %981, %v378_v50  }
  0x45   :  { %668 = vperm.xlu1 %982, %v630_v51  }
  0x46   :  { %441 = vperm.xlu0 %981, %v379_v52  }
  0x49   :  { %673 = vperm.xlu1 %982, %v631_v53  }
  0x4a   :  { %446 = vperm.xlu0 %981, %v380_v54  }
  0x4d   :  { %678 = vperm.xlu1 %982, %v632_v55  }
  0x4e   :  { %451 = vperm.xlu0 %981, %v381_v56  }
  0x51   :  { %683 = vperm.xlu1 %982, %v633_v57  }
  0x52   :  { %456 = vperm.xlu0 %981, %v382_v58  }
  0x55   :  { %688 = vperm.xlu1 %982, %v634_v59  }
  0x56   :  { %461 = vperm.xlu0 %981, %v383_v60  }
  0x59   :  { %698 = vperm.xlu1 %982, %v636_v61  }
  0x5a   :  { %693 = vperm.xlu0 %981, %v635_v62  }
  0x5d   :  { %708 = vperm.xlu1 %982, %v638_v63  }
  0x5e   :  { %703 = vperm.xlu0 %981, %v637_v0  }
  0x61   :  { %718 = vperm.xlu1 %982, %v640_v1  }
  0x62   :  { %713 = vperm.xlu0 %981, %v639_v2  }
  0x66   :  { %761 = vperm.xlu0 %981, %v758_v3  }
  0x84   :  { %v75_v6 = vpop.permute.xlu1 %74 }
  0x85   :  { %v65_v7 = vpop.permute.xlu0 %64 }
  0x88   :  { %v80_v8 = vpop.permute.xlu1 %79 }
  0x89   :  { %v70_v9 = vpop.permute.xlu0 %69 }
  0x8c   :  { %v90_v10 = vpop.permute.xlu1 %89 }
  0x8d   :  { %v85_v11 = vpop.permute.xlu0 %84 }
  0x90   :  { %v100_v16 = vpop.permute.xlu1 %99 }
  0x91   :  { %v95_v18 = vpop.permute.xlu0 %94 }
  0x94   :  { %v110_v25 = vpop.permute.xlu1 %109 }
  0x95   :  { %v105_v27 = vpop.permute.xlu0 %104 }
  0x98   :  { %v120_v35 = vpop.permute.xlu1 %119 }
  0x99   :  { %v115_v38 = vpop.permute.xlu0 %114 }
  0x9c   :  { %v130_v49 = vpop.permute.xlu1 %129 }
  0x9d   :  { %v125_v51 = vpop.permute.xlu0 %124 }
  0xa0   :  { %v140_v60 = vpop.permute.xlu1 %139 }
  0xa1   :  { %v135_v63 = vpop.permute.xlu0 %134 }
  0xdb   :  { %v853_v12 = vpop.f32.mrb[0].mxu0 }
  0xdc   :  { %v263_v13 = vadd.f32 %v853_v12, %v70_v9  ;;  %v257_v14 = vpop.f32.mrb[1].mxu0 }
  0xdd   :  { %v258_v15 = vadd.f32 %v257_v14, %v65_v7  ;;  %v353_v14 = vld [vmem:[%s1393_s3 + $0x8] sm:$0xff] }
  0xde   :  { %983 = vtanh.f32 %v263_v13 }
  0xdf   :  { %985 = vtanh.f32 %v258_v15  ;;  %v856_v17 = vpop.f32.mrb[2].mxu0  ;;  %v359_v15 = vld [vmem:[%s1393_s3 + $0x38] sm:$0xff] }
  0xe0   :  { %v273_v19 = vadd.f32 %v856_v17, %v80_v8  ;;  %v267_v20 = vpop.f32.mrb[3].mxu0  ;;  %v360_v17 = vld [vmem:[%s1393_s3 + $0x40] sm:$0xff] }
  0xe1   :  { %v268_v21 = vadd.f32 %v267_v20, %v75_v6  ;;  %v356_v20 = vld [vmem:[%s1393_s3 + $0x20] sm:$0xff] }
  0xe2   :  { %987 = vtanh.f32 %v273_v19  ;;  %v361_v19 = vld [vmem:[%s1393_s3 + $0x48] sm:$0xff] }
  0xe3   :  { %989 = vtanh.f32 %v268_v21  ;;  %v859_v22 = vpop.f32.mrb[4].mxu0  ;;  %v362_v21 = vld [vmem:[%s1393_s3 + $0x50] sm:$0xff] }
  0xe4   :  { %v283_v23 = vadd.f32 %v859_v22, %v90_v10  ;;  %v277_v24 = vpop.f32.mrb[5].mxu0  ;;  %v357_v22 = vld [vmem:[%s1393_s3 + $0x28] sm:$0xff] }
  0xe5   :  { %v278_v26 = vadd.f32 %v277_v24, %v85_v11  ;;  %v364_v24 = vld [vmem:[%s1393_s3 + $0x60] sm:$0xff] }
  0xe6   :  { %991 = vtanh.f32 %v283_v23  ;;  %v363_v23 = vld [vmem:[%s1393_s3 + $0x58] sm:$0xff] }
  0xe7   :  { %993 = vtanh.f32 %v278_v26  ;;  %v862_v28 = vpop.f32.mrb[6].mxu0  ;;  %v366_v26 = vld [vmem:[%s1393_s3 + $0x70] sm:$0xff] }
  0xe8   :  { %v984_v29 = vpop.eup %983  ;;  %v293_v30 = vadd.f32 %v862_v28, %v100_v16  ;;  %v287_v31 = vpop.f32.mrb[7].mxu0  ;;  %v354_v16 = vld [vmem:[%s1393_s3 + $0x10] sm:$0xff] }
  0xe9   :  { %v986_v32 = vpop.eup %985  ;;  %v288_v33 = vadd.f32 %v287_v31, %v95_v18  ;;  %v355_v18 = vld [vmem:[%s1393_s3 + $0x18] sm:$0xff]  ;;  %v392_v28 = vpop.permute.xlu1 %391 }
  0xea   :  { %995 = vtanh.f32 %v293_v30  ;;  %v931_v34 = vpack.c.bf16 %v984_v29, %v986_v32  ;;  %v387_v29 = vpop.permute.xlu0 %386 }
  0xeb   :  { %997 = vtanh.f32 %v288_v33  ;;  %v865_v36 = vpop.f32.mrb[8].mxu0 }
  0xec   :  { %v988_v37 = vpop.eup %987  ;;  %v303_v39 = vadd.f32 %v865_v36, %v110_v25  ;;  %v297_v40 = vpop.f32.mrb[9].mxu0  ;;  %932 = vmatprep.subr.bf16.mxu0 %v931_v34  ;;  %963 = vmatprep.subr.bf16.mxu1 %v931_v34  ;;  %v365_v25 = vld [vmem:[%s1393_s3 + $0x68] sm:$0xff] }
  0xed   :  { %v990_v41 = vpop.eup %989  ;;  %v298_v42 = vadd.f32 %v297_v40, %v105_v27  ;;  %934 = vmatpush3.bf16.msra.mxu0 %v931_v34  ;;  %971 = vmatpush3.bf16.msra.mxu1 %v931_v34  ;;  %v367_v27 = vld [vmem:[%s1393_s3 + $0x78] sm:$0xff]  ;;  %v402_v30 = vpop.permute.xlu1 %401  ;;  %s1072_s3 = smov [#allocation3]  }
  0xee   :  { %999 = vtanh.f32 %v303_v39  ;;  %v935_v43 = vpack.c.bf16 %v988_v37, %v990_v41  ;;  %v397_v31 = vpop.permute.xlu0 %396  ;;  %s776_s27 = sshll.u32 %s1072_s3, 4  ;;  %s777_s27 = int_to_ptr.vmem [resolvable:$true] %s776_s27 }
  0xef   :  { %1001 = vtanh.f32 %v298_v42  ;;  %v868_v44 = vpop.f32.mrb[10].mxu0  ;;  %s1047_s5 = scalar_lea.vmem %s777_s27, 16  ;;  %s1051_s28 = scalar_lea.vmem %s777_s27, 32 }
  0xf0   :  { %v992_v45 = vpop.eup %991  ;;  %v313_v46 = vadd.f32 %v868_v44, %v120_v35  ;;  %v307_v47 = vpop.f32.mrb[11].mxu0  ;;  %936 = vmatprep.subr.bf16.mxu0 %v935_v43  ;;  %964 = vmatprep.subr.bf16.mxu1 %v935_v43  ;;  %p1048_p0 = scmp.ne.s32.totalorder %s777_s27, %s1047_s5  ;;  %p1052_p1 = scmp.lt.s32.totalorder %s777_s27, %s777_s27 }
  0xf1   :  { %v994_v48 = vpop.eup %993  ;;  %v308_v50 = vadd.f32 %v307_v47, %v115_v38  ;;  %938 = vmatpush3.bf16.msra.mxu0 %v935_v43  ;;  %972 = vmatpush3.bf16.msra.mxu1 %v935_v43  ;;  %v412_v32 = vpop.permute.xlu1 %411  ;;  %p1053_p2 = scmp.lt.s32.totalorder %s1051_s28, %s1047_s5 }
  0xf2   :  { %1003 = vtanh.f32 %v313_v46  ;;  %v939_v52 = vpack.c.bf16 %v992_v45, %v994_v48  ;;  %v407_v33 = vpop.permute.xlu0 %406 }
  0xf3   :  { %1005 = vtanh.f32 %v308_v50  ;;  %v871_v53 = vpop.f32.mrb[12].mxu0  ;;  %p1054_p3 = por %p1053_p2, %p1052_p1 }
  0xf4   :  { %v996_v54 = vpop.eup %995  ;;  %v323_v55 = vadd.f32 %v871_v53, %v130_v49  ;;  %v317_v56 = vpop.f32.mrb[13].mxu0  ;;  %940 = vmatprep.subr.bf16.mxu0 %v939_v52  ;;  %965 = vmatprep.subr.bf16.mxu1 %v939_v52 }
  0xf5   :  { %v998_v57 = vpop.eup %997  ;;  %v318_v58 = vadd.f32 %v317_v56, %v125_v51  ;;  %942 = vmatpush3.bf16.msra.mxu0 %v939_v52  ;;  %973 = vmatpush3.bf16.msra.mxu1 %v939_v52  ;;  %v422_v34 = vpop.permute.xlu1 %421  ;;  %p1055_p4 = pnand %p1054_p3, %p1048_p0 }
  0xf6   :  { %1007 = vtanh.f32 %v323_v55  ;;  %v943_v59 = vpack.c.bf16 %v996_v54, %v998_v57  ;;  %v417_v35 = vpop.permute.xlu0 %416 }
  0xf7   :  { %1009 = vtanh.f32 %v318_v58  ;;  %v874_v61 = vpop.f32.mrb[14].mxu0 }
  0xf8   :  { %v1000_v62 = vpop.eup %999  ;;  %v333_v0 = vadd.f32 %v874_v61, %v140_v60  ;;  %v327_v1 = vpop.f32.mrb[15].mxu0  ;;  %944 = vmatprep.subr.bf16.mxu0 %v943_v59  ;;  %966 = vmatprep.subr.bf16.mxu1 %v943_v59 }
  0xf9   :  { %v1002_v2 = vpop.eup %1001  ;;  %v328_v3 = vadd.f32 %v327_v1, %v135_v63  ;;  %946 = vmatpush3.bf16.msra.mxu0 %v943_v59  ;;  %974 = vmatpush3.bf16.msra.mxu1 %v943_v59  ;;  %v649_v36 = vpop.permute.xlu1 %648 }
  0xfa   :  { %1011 = vtanh.f32 %v333_v0  ;;  %v947_v4 = vpack.c.bf16 %v1000_v62, %v1002_v2  ;;  %v644_v37 = vpop.permute.xlu0 %643 }
  0xfb   :  { %1013 = vtanh.f32 %v328_v3 }
  0xfc   :  { %v1004_v5 = vpop.eup %1003  ;;  %948 = vmatprep.subr.bf16.mxu0 %v947_v4  ;;  %967 = vmatprep.subr.bf16.mxu1 %v947_v4 }
  0xfd   :  { %v1006_v6 = vpop.eup %1005  ;;  %950 = vmatpush3.bf16.msra.mxu0 %v947_v4  ;;  %975 = vmatpush3.bf16.msra.mxu1 %v947_v4  ;;  %v654_v38 = vpop.permute.xlu1 %653 }
  0xfe   :  { %v951_v7 = vpack.c.bf16 %v1004_v5, %v1006_v6  ;;  %v427_v39 = vpop.permute.xlu0 %426 }
 0x100   :  { %v1008_v8 = vpop.eup %1007  ;;  %952 = vmatprep.subr.bf16.mxu0 %v951_v7  ;;  %968 = vmatprep.subr.bf16.mxu1 %v951_v7 }
 0x101   :  { %v1010_v9 = vpop.eup %1009  ;;  %954 = vmatpush3.bf16.msra.mxu0 %v951_v7  ;;  %976 = vmatpush3.bf16.msra.mxu1 %v951_v7  ;;  %v659_v40 = vpop.permute.xlu1 %658 }
 0x102   :  { %v955_v10 = vpack.c.bf16 %v1008_v8, %v1010_v9  ;;  %v432_v41 = vpop.permute.xlu0 %431 }
 0x104   :  { %v1012_v11 = vpop.eup %1011  ;;  %956 = vmatprep.subr.bf16.mxu0 %v955_v10  ;;  %969 = vmatprep.subr.bf16.mxu1 %v955_v10 }
 0x105   :  { %v1014_v12 = vpop.eup %1013  ;;  %958 = vmatpush3.bf16.msra.mxu0 %v955_v10  ;;  %977 = vmatpush3.bf16.msra.mxu1 %v955_v10  ;;  %v664_v42 = vpop.permute.xlu1 %663 }
 0x106   :  { %v959_v13 = vpack.c.bf16 %v1012_v11, %v1014_v12  ;;  %v437_v43 = vpop.permute.xlu0 %436 }
 0x108   :  { %960 = vmatprep.subr.bf16.mxu0 %v959_v13  ;;  %970 = vmatprep.subr.bf16.mxu1 %v959_v13 }
 0x109   :  { %962 = vmatpush3.bf16.msra.mxu0 %v959_v13  ;;  %978 = vmatpush3.bf16.msra.mxu1 %v959_v13  ;;  %v1375_v44 = vpop.permute.xlu1 %668 }
 0x10a   :  { %v442_v45 = vpop.permute.xlu0 %441 }
 0x10c   :  { %908 = vmatmul.mubr.f32.vlgmr.msra.gmra.mrb[16].mxu0 %v353_v14  ;;  %917 = vmatmul.mubr.f32.vlgmr.msra.gmra.mrb[0].mxu1 %v359_v15 }
 0x10d   :  { %910 = vmatprep.mubr.f32.mxu0 %v354_v16  ;;  %919 = vmatprep.mubr.f32.mxu1 %v360_v17  ;;  %v674_v58 = vpop.permute.xlu1 %673 }
 0x10e   :  { %v447_v59 = vpop.permute.xlu0 %446 }
 0x110   :  { %911 = vmatmul.mubr.f32.gmra.mrb[18].mxu0 %v355_v18  ;;  %920 = vmatmul.mubr.f32.gmra.mrb[2].mxu1 %v361_v19 }
 0x111   :  { %913 = vmatprep.mubr.f32.mxu0 %v356_v20  ;;  %922 = vmatprep.mubr.f32.mxu1 %v362_v21  ;;  %v679_v10 = vpop.permute.xlu1 %678 }
 0x112   :  { %v452_v5 = vpop.permute.xlu0 %451 }
 0x114   :  { %914 = vmatmul.mubr.f32.gmra.mrb[20].mxu0 %v357_v22  ;;  %923 = vmatmul.mubr.f32.gmra.mrb[4].mxu1 %v363_v23 }
 0x115   :  { %925 = vmatprep.mubr.f32.mxu1 %v364_v24  ;;  %v684_v22 = vpop.permute.xlu1 %683 }
 0x116   :  { %v457_v19 = vpop.permute.xlu0 %456 }
 0x118   :  { %926 = vmatmul.mubr.f32.gmra.mrb[6].mxu1 %v365_v25 }
 0x119   :  { %928 = vmatprep.mubr.f32.mxu1 %v366_v26 }
 0x11c   :  { %929 = vmatmul.mubr.f32.gmra.mrb[8].mxu1 %v367_v27 }
 0x1df   :  { %v909_v46 = vpop.f32.mrb[16].mxu0  ;;  %v918_v47 = vpop.f32.mrb[0].mxu1 }
 0x1e0   :  { %v536_v48 = vadd.f32 %v909_v46, %v392_v28  ;;  %v530_v49 = vpop.f32.mrb[17].mxu0  ;;  %v560_v50 = vpop.f32.mrb[1].mxu1  ;;  %v566_v6 = vadd.f32 %v918_v47, %v422_v34 }
 0x1e1   :  { %v531_v51 = vadd.f32 %v530_v49, %v387_v29  ;;  %v561_v2 = vadd.f32 %v560_v50, %v417_v35 }
 0x1e2   :  { %1015 = vtanh.f32 %v536_v48 }
 0x1e3   :  { %v912_v52 = vpop.f32.mrb[18].mxu0  ;;  %v921_v53 = vpop.f32.mrb[2].mxu1  ;;  %1017 = vtanh.f32 %v531_v51 }
 0x1e4   :  { %v546_v54 = vadd.f32 %v912_v52, %v402_v30  ;;  %v540_v55 = vpop.f32.mrb[19].mxu0  ;;  %v570_v56 = vpop.f32.mrb[3].mxu1  ;;  %v576_v14 = vadd.f32 %v921_v53, %v432_v41 }
 0x1e5   :  { %v541_v57 = vadd.f32 %v540_v55, %v397_v31  ;;  %v571_v11 = vadd.f32 %v570_v56, %v427_v39 }
 0x1e6   :  { %1019 = vtanh.f32 %v546_v54 }
 0x1e7   :  { %v915_v60 = vpop.f32.mrb[20].mxu0  ;;  %v924_v61 = vpop.f32.mrb[4].mxu1  ;;  %1021 = vtanh.f32 %v541_v57 }
 0x1e8   :  { %v556_v62 = vadd.f32 %v915_v60, %v412_v32  ;;  %v550_v63 = vpop.f32.mrb[21].mxu0  ;;  %v580_v0 = vpop.f32.mrb[5].mxu1  ;;  %v586_v23 = vadd.f32 %v924_v61, %v442_v45 }
 0x1e9   :  { %v551_v1 = vadd.f32 %v550_v63, %v407_v33  ;;  %v581_v20 = vadd.f32 %v580_v0, %v437_v43  ;;  %v462_v32 = vpop.permute.xlu0 %461 }
 0x1ea   :  { %1023 = vtanh.f32 %v556_v62 }
 0x1eb   :  { %v927_v3 = vpop.f32.mrb[6].mxu1  ;;  %1025 = vtanh.f32 %v551_v1 }
 0x1ec   :  { %v1016_v4 = vpop.eup %1015  ;;  %v590_v7 = vpop.f32.mrb[7].mxu1  ;;  %1027 = vtanh.f32 %v561_v2  ;;  %v596_v33 = vadd.f32 %v927_v3, %v452_v5 }
 0x1ed   :  { %v722_v8 = vmul.f32 %v1016_v4, %v649_v36  ;;  %v1018_v9 = vpop.eup %1017  ;;  %1029 = vtanh.f32 %v566_v6  ;;  %v591_v28 = vadd.f32 %v590_v7, %v447_v59  ;;  %v694_v47 = vpop.permute.xlu0 %693 }
 0x1ee   :  { %v721_v12 = vmul.f32 %v1018_v9, %v644_v37  ;;  %1031 = vtanh.f32 %v571_v11  ;;  %v689_v37 = vpop.permute.xlu1 %688 }
 0x1ef   :  { %v930_v13 = vpop.f32.mrb[8].mxu1  ;;  %1033 = vtanh.f32 %v576_v14 }
 0x1f0   :  { %v600_v15 = vpop.f32.mrb[9].mxu1  ;;  %v1020_v16 = vpop.eup %1019  ;;  %v737_v17 = vadd.f32 %v722_v8, %v721_v12  ;;  %1035 = vtanh.f32 %v581_v20  ;;  %v606_v43 = vadd.f32 %v930_v13, %v462_v32 }
 0x1f1   :  { %v1022_v18 = vpop.eup %1021  ;;  %v724_v25 = vmul.f32 %v1020_v16, %v659_v40  ;;  %1037 = vtanh.f32 %v586_v23  ;;  %v704_v57 = vpop.permute.xlu0 %703 }
 0x1f2   :  { %v723_v21 = vmul.f32 %v1022_v18, %v654_v38  ;;  %1039 = vtanh.f32 %v591_v28  ;;  %v601_v38 = vadd.f32 %v600_v15, %v457_v19  ;;  %v699_v51 = vpop.permute.xlu1 %698 }
 0x1f3   :  { %1041 = vtanh.f32 %v596_v33 }
 0x1f4   :  { %v1024_v24 = vpop.eup %1023  ;;  %v738_v26 = vadd.f32 %v737_v17, %v723_v21  ;;  %1043 = vtanh.f32 %v601_v38 }
 0x1f5   :  { %v1026_v27 = vpop.eup %1025  ;;  %v726_v34 = vmul.f32 %v1024_v24, %v1375_v44  ;;  %1045 = vtanh.f32 %v606_v43  ;;  %v714_v4 = vpop.permute.xlu0 %713 }
 0x1f6   :  { %v725_v29 = vmul.f32 %v1026_v27, %v664_v42  ;;  %v739_v30 = vadd.f32 %v738_v26, %v724_v25  ;;  %v1028_v31 = vpop.eup %1027  ;;  %v709_v61 = vpop.permute.xlu1 %708 }
 0x1f7   :  { %v1030_v36 = vpop.eup %1029  ;;  %v727_v39 = vmul.f32 %v1028_v31, %v674_v58 }
 0x1f8   :  { %v740_v35 = vadd.f32 %v739_v30, %v725_v29  ;;  %v1032_v40 = vpop.eup %1031  ;;  %v728_v45 = vmul.f32 %v1030_v36, %v679_v10  ;;  %v764_v10 = vlaneseq }
 0x1f9   :  { %v1034_v42 = vpop.eup %1033  ;;  %v729_v48 = vmul.f32 %v1032_v40, %v684_v22  ;;  %v762_v18 = vpop.permute.xlu0 %761 }
 0x1fa   :  { %v741_v41 = vadd.f32 %v740_v35, %v726_v34  ;;  %v1036_v50 = vpop.eup %1035  ;;  %v730_v44 = vmul.f32 %v1034_v42, %v689_v37  ;;  %v719_v7 = vpop.permute.xlu1 %718  ;;  %v765_v13 = vshrl.u32 %v764_v10, 7 }
 0x1fb   :  { %v1038_v53 = vpop.eup %1037  ;;  %v731_v54 = vmul.f32 %v1036_v50, %v694_v47 }
 0x1fc   :  { %v742_v46 = vadd.f32 %v741_v41, %v727_v39  ;;  %v1040_v56 = vpop.eup %1039  ;;  %v732_v58 = vmul.f32 %v1038_v53, %v699_v51  ;;  %v766_v16 = vsub.s32 0, %v765_v13 }
 0x1fd   :  { %v1042_v60 = vpop.eup %1041  ;;  %v733_v62 = vmul.f32 %v1040_v56, %v704_v57 }
 0x1fe   :  { %v743_v49 = vadd.f32 %v742_v46, %v728_v45  ;;  %v1044_v0 = vpop.eup %1043  ;;  %v734_v1 = vmul.f32 %v1042_v60, %v709_v61  ;;  %v767_v20 = vrot.slane %v762_v18, %v766_v16 }
 0x1ff   :  { %v1046_v3 = vpop.eup %1045  ;;  %v735_v5 = vmul.f32 %v1044_v0, %v714_v4 }
 0x200   :  { %v744_v52 = vadd.f32 %v743_v49, %v729_v48  ;;  %v736_v8 = vmul.f32 %v1046_v3, %v719_v7 }
 0x202   :  { %v745_v55 = vadd.f32 %v744_v52, %v730_v44 }
 0x204   :  { %v746_v59 = vadd.f32 %v745_v55, %v731_v54 }
 0x206   :  { %v747_v63 = vadd.f32 %v746_v59, %v732_v58 }
 0x208   :  { %v748_v2 = vadd.f32 %v747_v63, %v733_v62 }
 0x20a   :  { %v749_v6 = vadd.f32 %v748_v2, %v734_v1 }
 0x20c   :  { %v750_v9 = vadd.f32 %v749_v6, %v735_v5 }
 0x20e   :  { %v751_v11 = vadd.f32 %v750_v9, %v736_v8 }
 0x210   :  { %v752_v12 = vrot.slane %v751_v11, 4 }
 0x212   :  { %v753_v14 = vadd.f32 %v752_v12, %v751_v11 }
 0x214   :  { %v754_v15 = vrot.slane %v753_v14, 2 }
 0x216   :  { %v755_v17 = vadd.f32 %v754_v15, %v753_v14 }
 0x218   :  { %v756_v19 = vrot.slane %v755_v17, 1 }
 0x21a   :  { %v757_v21 = vadd.f32 %v756_v19, %v755_v17 }
 0x21c   :  { %v768_v22 = vadd.f32 %v767_v20, %v757_v21 }
 0x21e   :  { %769 = vst [vmem:[#allocation3] sm:$0x1] %v768_v22 }
 0x21f   :  { %1058 = shalt.err (!%p1055_p4)
}
 0x220   :  { %s1059_s8 = scalar_lea.hbm %s1397_s7, 16 }
 0x221   :  { %p1060_p5 = scmp.ne.s32.totalorder %s1397_s7, %s1059_s8  ;;  %p1063_p6 = scmp.lt.u32.totalorder %s1059_s8, %s1397_s7 }
 0x223   :  { %p1065_p7 = pnand %p1063_p6, %p1060_p5 }
 0x225   :  { %1068 = shalt.err (!%p1065_p7)
}
 0x226   :  { %779 = dma.vmem_to_hbm [thread:$0]  %s777_s27, 16, %s1397_s7, [#allocation4]  }
 0x227   :  { %1069 = dma.done.wait [#allocation4], 16  }
 0x228   :  { %1070 = vsyncadd [#allocation4], 4294967280 }
 0x229   :  { %783 = vsyncpa [#allocation4], 1 }

</bundles_post_ra>
